<compile_context>
chip_gen: v6e
topology: v6e:2x2x1
jax: 0.10.0
libtpu: 0.0.40
codegen_flags: <defaults>
</compile_context>

<pallas_src>
import math

import jax
import jax.numpy as jnp
import numpy as np
from jax.experimental import pallas as pl
from jax.experimental.pallas import tpu as pltpu

_LANE = 128
_SUBLANE = 8


def _round_up(n, m):
    return ((n + m - 1) // m) * m


def _nbytes(a):
    return int(np.prod(a.shape)) * jnp.dtype(a.dtype).itemsize


# ----------------------------------------------------------------------------
# Kernel body: one res-block (+ folded attention) of one batch tile per step.
# ----------------------------------------------------------------------------
def make_kernel(num_layers):
    inv_sqrt2 = 1.0 / math.sqrt(2.0)

    def kernel(*refs):
        # refs = [x,
        #         (beta_i, w_i, b_i) per layer   (streamed, leading dim 1),
        #         w_attn (1,Dp,Dp), b_attn (1,1,Dp), scale (1,Dp),
        #         out, acc_scratch]
        x_ref = refs[0]
        layer_refs = refs[1:1 + 3 * num_layers]
        (w_attn_ref, b_attn_ref, scale_ref,
         out_ref, acc_ref) = refs[1 + 3 * num_layers:]

        k = pl.program_id(1)

        @pl.when(k == 0)
        def _():
            acc_ref[...] = x_ref[...].astype(jnp.float32)

        y = acc_ref[...]                           # (tm, Dp) carried activation, f32

        # ---- res-block: (Swish -> weight_norm Linear) * num_layers ----------
        h = y
        for i in range(num_layers):
            beta = layer_refs[3 * i][0]            # (1, in_i)   f32
            w = layer_refs[3 * i + 1][0]           # (in_i, out_i) bf16
            b = layer_refs[3 * i + 2][0]           # (1, out_i)  f32
            h = h * jax.nn.sigmoid(beta * h)       # Swish (learnable beta), f32
            h = jnp.dot(h.astype(w.dtype), w,
                        preferred_element_type=jnp.float32) + b

        y = (y + h) * inv_sqrt2                    # residual / sqrt(2)

        # ---- seq_len==1 MultiheadAttention folded into a single GEMM --------
        wa = w_attn_ref[0]                         # (Dp, Dp) bf16
        y = jnp.dot(y.astype(wa.dtype), wa,
                    preferred_element_type=jnp.float32) + b_attn_ref[0]
        acc_ref[...] = y

        # ---- final Scale + Tanh after the last block -------------------------
        @pl.when(k == pl.num_programs(1) - 1)
        def _():
            out_ref[...] = jnp.tanh(y * scale_ref[...]).astype(out_ref.dtype)

    return kernel


# ----------------------------------------------------------------------------
# Tiling
# ----------------------------------------------------------------------------
def _choose_batch_tile(B):
    """Batch tile: multiple of 8, >=128 when B allows (fills the MXU M dim),
    capped at 512; for large B aim for >=2 tiles so v7x's two TensorCores both
    get work under dimension_semantics=('parallel', ...)."""
    if B <= 128:
        tm = _round_up(max(B, _SUBLANE), _SUBLANE)
    else:
        tm = min(512, _round_up(pl.cdiv(B, 2), 128))
    return tm, _round_up(B, tm)


# ----------------------------------------------------------------------------
# Wrapper
# ----------------------------------------------------------------------------
def resnet_reshape_forward(x, kernel_params):
    betas, ws, bs, w_attn, b_attn, scale = kernel_params
    shape = x.shape
    B = shape[0]
    y = x.reshape(B, -1).astype(jnp.float32)       # x.view(B, -1)
    D = y.shape[1]
    Dp = w_attn.shape[-1]                          # lane-padded feature dim
    assert Dp == _round_up(D, _LANE), "params were prepared for a different D"
    num_blocks = w_attn.shape[0]
    num_layers = len(ws)

    tm, B_pad = _choose_batch_tile(B)
    if (B_pad, Dp) != (B, D):
        y = jnp.pad(y, ((0, B_pad - B), (0, Dp - D)))
    grid = (B_pad // tm, num_blocks)

    stream_args = []
    for i in range(num_layers):
        stream_args += [betas[i], ws[i], bs[i]]
    stream_args += [w_attn, b_attn]

    def block_spec(a):                             # stream one block per k step
        nd = a.ndim
        return pl.BlockSpec((1,) + a.shape[1:],
                            lambda i, k, _nd=nd: (k,) + (0,) * (_nd - 1))

    in_specs = [pl.BlockSpec((tm, Dp), lambda i, k: (i, 0))]
    in_specs += [block_spec(a) for a in stream_args]
    in_specs += [pl.BlockSpec(scale.shape, lambda i, k: (0, 0))]

    # --- cost estimate (advisory) & VMEM budget ------------------------------
    layer_macs = sum(int(w.shape[1]) * int(w.shape[2]) for w in ws) + Dp * Dp
    flops = 2 * B_pad * num_blocks * layer_macs
    transcendentals = B_pad * (num_blocks * sum(int(w.shape[1]) for w in ws) + Dp)
    weight_bytes = sum(_nbytes(a) for a in stream_args) + _nbytes(scale)
    cost = pl.CostEstimate(flops=flops, transcendentals=transcendentals,
                           bytes_accessed=weight_bytes + 2 * B_pad * Dp * 4)

    per_block_bytes = sum(_nbytes(a) // num_blocks for a in stream_args)
    max_width = max(int(w.shape[2]) for w in ws)
    act_bytes = tm * Dp * 4
    vmem_est = (2 * per_block_bytes                # double-buffered streamed weights
                + 2 * _nbytes(scale)
                + 2 * act_bytes                    # x double-buffer
                + 2 * act_bytes                    # out double-buffer
                + act_bytes                        # carried activation scratch
                + 4 * tm * max_width * 4)          # elementwise temporaries headroom
    vmem_limit = int(min(64 * 2**20, max(32 * 2**20, int(vmem_est * 1.5))))

    out = pl.pallas_call(
        make_kernel(num_layers),
        out_shape=jax.ShapeDtypeStruct((B_pad, Dp), jnp.float32),
        grid=grid,
        in_specs=in_specs,
        out_specs=pl.BlockSpec((tm, Dp), lambda i, k: (i, 0)),
        scratch_shapes=[pltpu.VMEM((tm, Dp), jnp.float32)],
        input_output_aliases={0: 0},               # alias padded activation -> out
        compiler_params=pltpu.CompilerParams(
            dimension_semantics=("parallel", "arbitrary"),
            vmem_limit_bytes=vmem_limit),
        cost_estimate=cost,
    )(y, *stream_args, scale)

    out = out[:B, :D]
    return out.astype(x.dtype).reshape(shape)      # x.view(shape)


# ----------------------------------------------------------------------------
# Deterministic parameter init (synthetic; matches the module's shapes)
# ----------------------------------------------------------------------------
def init_params(key, widths, num_res_blocks):
    assert widths[0] == widths[-1]
    E = widths[0]
    layer_params, attn_params = [], []
    for _ in range(num_res_blocks):
        blk = []
        for i in range(len(widths) - 1):
            fan_in, fan_out = widths[i], widths[i + 1]
            key, kw = jax.random.split(key)
            bound = math.sqrt(2.81 * 3 / fan_in)
            v = jax.random.uniform(kw, (fan_out, fan_in), jnp.float32, -bound, bound)
            # weight_norm: W = g * V/||V||_row, g init = ||V||_row  =>  W == V
            row_norm = jnp.linalg.norm(v, axis=1, keepdims=True)
            w_eff = row_norm * v / row_norm
            b = jnp.zeros((1, fan_out), jnp.float32)
            beta = jnp.ones((1, fan_in), jnp.float32)   # learnable-beta swish
            blk.append((beta, w_eff.T, b))              # store W as (in, out)
        layer_params.append(blk)

        # MultiheadAttention params (in_proj (3E,E) xavier, out_proj (E,E))
        key, k1, k2 = jax.random.split(key, 3)
        xav = math.sqrt(6.0 / (3 * E + E))
        in_proj_w = jax.random.uniform(k1, (3 * E, E), jnp.float32, -xav, xav)
        wv = in_proj_w[2 * E:]                          # V-projection slice
        bv = jnp.zeros((1, E), jnp.float32)
        lim = 1.0 / math.sqrt(E)
        wo = jax.random.uniform(k2, (E, E), jnp.float32, -lim, lim)
        bo = jnp.zeros((1, E), jnp.float32)
        attn_params.append((wv.T, bv, wo.T, bo))

    scale = jnp.ones((1, widths[-1]), jnp.float32)      # Scale(widths[-1])
    return layer_params, attn_params, scale


def prepare_kernel_params(layer_params, attn_params, scale,
                          weight_dtype=jnp.bfloat16, lane=_LANE):
    """Stack per-block params along a leading block axis, fold the length-1
    attention into one (D,D)+(1,D) pair (fold in f32), zero-pad every feature
    dim to a multiple of `lane`, cast matmul weights to bf16 for the MXU."""
    num_layers = len(layer_params[0])
    betas, ws, bs = [], [], []
    for i in range(num_layers):
        beta = jnp.stack([blk[i][0] for blk in layer_params])   # (NB, 1, in)
        w = jnp.stack([blk[i][1] for blk in layer_params])      # (NB, in, out)
        b = jnp.stack([blk[i][2] for blk in layer_params])      # (NB, 1, out)
        in_p = _round_up(w.shape[1], lane)
        out_p = _round_up(w.shape[2], lane)
        betas.append(jnp.pad(beta, ((0, 0), (0, 0), (0, in_p - beta.shape[2]))))
        ws.append(jnp.pad(w, ((0, 0), (0, in_p - w.shape[1]),
                              (0, out_p - w.shape[2]))).astype(weight_dtype))
        bs.append(jnp.pad(b, ((0, 0), (0, 0), (0, out_p - b.shape[2]))))

    # Fold in f32, then pad + cast only the folded result.
    w_attn = jnp.stack([wv @ wo for (wv, _bv, wo, _bo) in attn_params])     # (NB,D,D)
    b_attn = jnp.stack([bv @ wo + bo for (_wv, bv, wo, bo) in attn_params]) # (NB,1,D)
    D = w_attn.shape[-1]
    Dp = _round_up(D, lane)
    w_attn = jnp.pad(w_attn, ((0, 0), (0, Dp - D), (0, Dp - D))).astype(weight_dtype)
    b_attn = jnp.pad(b_attn, ((0, 0), (0, 0), (0, Dp - D)))
    scale_p = jnp.pad(scale, ((0, 0), (0, Dp - D)))
    return betas, ws, bs, w_attn, b_attn, scale_p


# ----------------------------------------------------------------------------
# Pure-JAX references
# ----------------------------------------------------------------------------
def reference_forward(x, layer_params, attn_params, scale):
    """f32, unfolded attention — the module's math."""
    shape = x.shape
    y = x.reshape(shape[0], -1)
    for blk, (wv, bv, wo, bo) in zip(layer_params, attn_params):
        h = y
        for beta, w, b in blk:
            h = h * jax.nn.sigmoid(beta * h)
            h = h @ w + b
        y = (y + h) / math.sqrt(2.0)
        v = y @ wv + bv
        y = v @ wo + bo
    y = jnp.tanh(y * scale)
    return y.reshape(shape)


def reference_forward_prepared(x, kernel_params):
    """Same padded/folded/bf16 params as the kernel (isolates Pallas numerics)."""
    betas, ws, bs, w_attn, b_attn, scale = kernel_params
    shape = x.shape
    y = x.reshape(shape[0], -1).astype(jnp.float32)
    D = y.shape[1]
    Dp = w_attn.shape[-1]
    y = jnp.pad(y, ((0, 0), (0, Dp - D)))
    for blk in range(w_attn.shape[0]):
        h = y
        for i in range(len(ws)):
            h = h * jax.nn.sigmoid(betas[i][blk] * h)
            h = jnp.dot(h.astype(ws[i].dtype), ws[i][blk],
                        preferred_element_type=jnp.float32) + bs[i][blk]
        y = (y + h) / math.sqrt(2.0)
        y = jnp.dot(y.astype(w_attn.dtype), w_attn[blk],
                    preferred_element_type=jnp.float32) + b_attn[blk]
    y = jnp.tanh(y * scale)
    return y[:, :D].reshape(shape)


# ----------------------------------------------------------------------------
if __name__ == "__main__":
    key = jax.random.PRNGKey(0)

    # NCHW input flattened to D = C*H*W.  D = 192 is NOT a multiple of 128, so
    # the lane-padding path is exercised; num_heads = 4 divides 192.
    B, C, H, W = 2, 3, 8, 8
    D = C * H * W                      # 192
    widths = [D, 2 * D, D]             # two (Swish, Linear) layers per block
    num_res_blocks = 2

    key, kp, kx = jax.random.split(key, 3)
    layer_params, attn_params, scale = init_params(kp, widths, num_res_blocks)
    kernel_params = prepare_kernel_params(layer_params, attn_params, scale)
    x = jax.random.normal(kx, (B, C, H, W), jnp.float32)

    y = jax.jit(resnet_reshape_forward)(x, kernel_params)
    y = jax.block_until_ready(y)

    # (1) vs. a reference using the exact same prepared (bf16, folded) params.
    y_match = reference_forward_prepared(x, kernel_params)
    np.testing.assert_allclose(np.asarray(y), np.asarray(y_match),
                               rtol=2e-3, atol=2e-3)
    # (2) vs. the pure-f32, unfolded-attention module math (bf16 tolerance).
    y_ref = reference_forward(x, layer_params, attn_params, scale)
    np.testing.assert_allclose(np.asarray(y), np.asarray(y_ref),
                               rtol=5e-2, atol=5e-2)

    print("KERNEL_OK")
</pallas_src>

<mosaic_0001>
module attributes {stable_mosaic.version = 11 : i64} {
  func.func @kernel(%arg0: i32, %arg1: i32, %arg2: memref<8x256xf32, #tpu.memory_space<vmem>>, %arg3: memref<1x1x256xf32, #tpu.memory_space<vmem>>, %arg4: memref<1x256x384xbf16, #tpu.memory_space<vmem>>, %arg5: memref<1x1x384xf32, #tpu.memory_space<vmem>>, %arg6: memref<1x1x384xf32, #tpu.memory_space<vmem>>, %arg7: memref<1x384x256xbf16, #tpu.memory_space<vmem>>, %arg8: memref<1x1x256xf32, #tpu.memory_space<vmem>>, %arg9: memref<1x256x256xbf16, #tpu.memory_space<vmem>>, %arg10: memref<1x1x256xf32, #tpu.memory_space<vmem>>, %arg11: memref<1x256xf32, #tpu.memory_space<vmem>>, %arg12: memref<8x256xf32, #tpu.memory_space<vmem>>, %arg13: memref<8x256xf32, #tpu.memory_space<vmem>>) attributes {dimension_semantics = [#tpu.dimension_semantics<parallel>, #tpu.dimension_semantics<arbitrary>], iteration_bounds = array<i64: 1, 2>, scalar_prefetch = 0 : i64, scratch_operands = 1 : i64, tpu.core_type = #tpu.core_type<tc>, window_params = [{transform_indices = @transform_0, window_bounds = array<i64: 8, 256>}, {transform_indices = @transform_1, window_bounds = array<i64: 1, 1, 256>}, {transform_indices = @transform_2, window_bounds = array<i64: 1, 256, 384>}, {transform_indices = @transform_3, window_bounds = array<i64: 1, 1, 384>}, {transform_indices = @transform_4, window_bounds = array<i64: 1, 1, 384>}, {transform_indices = @transform_5, window_bounds = array<i64: 1, 384, 256>}, {transform_indices = @transform_6, window_bounds = array<i64: 1, 1, 256>}, {transform_indices = @transform_7, window_bounds = array<i64: 1, 256, 256>}, {transform_indices = @transform_8, window_bounds = array<i64: 1, 1, 256>}, {pipeline_mode = #tpu.pipeline_mode<synchronous>, transform_indices = @transform_9, window_bounds = array<i64: 1, 256>}, {transform_indices = @transform_10, window_bounds = array<i64: 8, 256>}]} {
    %c0_i32 = arith.constant 0 : i32
    %0 = arith.cmpi eq, %arg1, %c0_i32 : i32
    %1 = arith.extui %0 : i1 to i32
    %c0_i32_0 = arith.constant 0 : i32
    %2 = arith.cmpi ne, %1, %c0_i32_0 : i32
    scf.if %2 {
      %c0_34 = arith.constant 0 : index
      %c0_35 = arith.constant 0 : index
      %55 = vector.load %arg2[%c0_34, %c0_35] : memref<8x256xf32, #tpu.memory_space<vmem>>, vector<8x256xf32>
      %c0_36 = arith.constant 0 : index
      %c0_37 = arith.constant 0 : index
      %56 = vector.load %arg13[%c0_36, %c0_37] : memref<8x256xf32, #tpu.memory_space<vmem>>, vector<8x256xf32>
      tpu.vector_store %arg13[%c0_36, %c0_37], %55 {strides = array<i32>} : memref<8x256xf32, #tpu.memory_space<vmem>>, vector<8x256xf32>,
    } else {
    }
    %c0 = arith.constant 0 : index
    %c0_1 = arith.constant 0 : index
    %3 = vector.load %arg13[%c0, %c0_1] : memref<8x256xf32, #tpu.memory_space<vmem>>, vector<8x256xf32>
    %c0_2 = arith.constant 0 : index
    %c0_3 = arith.constant 0 : index
    %c0_4 = arith.constant 0 : index
    %4 = vector.load %arg3[%c0_2, %c0_3, %c0_4] : memref<1x1x256xf32, #tpu.memory_space<vmem>>, vector<1x1x256xf32>
    %5 = vector.shape_cast %4 : vector<1x1x256xf32> to vector<1x256xf32>
    %c0_5 = arith.constant 0 : index
    %c0_6 = arith.constant 0 : index
    %c0_7 = arith.constant 0 : index
    %6 = vector.load %arg4[%c0_5, %c0_6, %c0_7] : memref<1x256x384xbf16, #tpu.memory_space<vmem>>, vector<1x256x384xbf16>
    %7 = vector.shape_cast %6 : vector<1x256x384xbf16> to vector<256x384xbf16>
    %c0_8 = arith.constant 0 : index
    %c0_9 = arith.constant 0 : index
    %c0_10 = arith.constant 0 : index
    %8 = vector.load %arg5[%c0_8, %c0_9, %c0_10] : memref<1x1x384xf32, #tpu.memory_space<vmem>>, vector<1x1x384xf32>
    %9 = vector.shape_cast %8 : vector<1x1x384xf32> to vector<1x384xf32>
    %10 = vector.broadcast %5 : vector<1x256xf32> to vector<8x256xf32>
    %11 = arith.mulf %10, %3 : vector<8x256xf32>
    %12 = arith.negf %11 : vector<8x256xf32>
    %13 = math.exp %12 : vector<8x256xf32>
    %cst = arith.constant 1.000000e+00 : f32
    %14 = vector.broadcast %cst : f32 to vector<8x256xf32>
    %15 = arith.addf %14, %13 : vector<8x256xf32>
    %16 = arith.divf %14, %15 : vector<8x256xf32>
    %17 = arith.mulf %3, %16 : vector<8x256xf32>
    %18 = arith.truncf %17 : vector<8x256xf32> to vector<8x256xbf16>
    %cst_11 = arith.constant dense<0.000000e+00> : vector<8x384xf32>
    %19 = tpu.matmul %18, %7, %cst_11 {dimension_numbers = #tpu.dot_dimension_numbers<[1], [0], [0], [1], [0, 0, 1, 1], [], []>} : vector<8x256xbf16>, vector<256x384xbf16>, vector<8x384xf32> -> vector<8x384xf32>
    %20 = vector.broadcast %9 : vector<1x384xf32> to vector<8x384xf32>
    %21 = arith.addf %19, %20 : vector<8x384xf32>
    %c0_12 = arith.constant 0 : index
    %c0_13 = arith.constant 0 : index
    %c0_14 = arith.constant 0 : index
    %22 = vector.load %arg6[%c0_12, %c0_13, %c0_14] : memref<1x1x384xf32, #tpu.memory_space<vmem>>, vector<1x1x384xf32>
    %23 = vector.shape_cast %22 : vector<1x1x384xf32> to vector<1x384xf32>
    %c0_15 = arith.constant 0 : index
    %c0_16 = arith.constant 0 : index
    %c0_17 = arith.constant 0 : index
    %24 = vector.load %arg7[%c0_15, %c0_16, %c0_17] : memref<1x384x256xbf16, #tpu.memory_space<vmem>>, vector<1x384x256xbf16>
    %25 = vector.shape_cast %24 : vector<1x384x256xbf16> to vector<384x256xbf16>
    %c0_18 = arith.constant 0 : index
    %c0_19 = arith.constant 0 : index
    %c0_20 = arith.constant 0 : index
    %26 = vector.load %arg8[%c0_18, %c0_19, %c0_20] : memref<1x1x256xf32, #tpu.memory_space<vmem>>, vector<1x1x256xf32>
    %27 = vector.shape_cast %26 : vector<1x1x256xf32> to vector<1x256xf32>
    %28 = vector.broadcast %23 : vector<1x384xf32> to vector<8x384xf32>
    %29 = arith.mulf %28, %21 : vector<8x384xf32>
    %30 = arith.negf %29 : vector<8x384xf32>
    %31 = math.exp %30 : vector<8x384xf32>
    %cst_21 = arith.constant 1.000000e+00 : f32
    %32 = vector.broadcast %cst_21 : f32 to vector<8x384xf32>
    %33 = arith.addf %32, %31 : vector<8x384xf32>
    %34 = arith.divf %32, %33 : vector<8x384xf32>
    %35 = arith.mulf %21, %34 : vector<8x384xf32>
    %36 = arith.truncf %35 : vector<8x384xf32> to vector<8x384xbf16>
    %cst_22 = arith.constant dense<0.000000e+00> : vector<8x256xf32>
    %37 = tpu.matmul %36, %25, %cst_22 {dimension_numbers = #tpu.dot_dimension_numbers<[1], [0], [0], [1], [0, 0, 1, 1], [], []>} : vector<8x384xbf16>, vector<384x256xbf16>, vector<8x256xf32> -> vector<8x256xf32>
    %38 = vector.broadcast %27 : vector<1x256xf32> to vector<8x256xf32>
    %39 = arith.addf %37, %38 : vector<8x256xf32>
    %40 = arith.addf %3, %39 : vector<8x256xf32>
    %cst_23 = arith.constant 0.707106769 : f32
    %41 = vector.broadcast %cst_23 : f32 to vector<8x256xf32>
    %42 = arith.mulf %40, %41 : vector<8x256xf32>
    %c0_24 = arith.constant 0 : index
    %c0_25 = arith.constant 0 : index
    %c0_26 = arith.constant 0 : index
    %43 = vector.load %arg9[%c0_24, %c0_25, %c0_26] : memref<1x256x256xbf16, #tpu.memory_space<vmem>>, vector<1x256x256xbf16>
    %44 = vector.shape_cast %43 : vector<1x256x256xbf16> to vector<256x256xbf16>
    %45 = arith.truncf %42 : vector<8x256xf32> to vector<8x256xbf16>
    %cst_27 = arith.constant dense<0.000000e+00> : vector<8x256xf32>
    %46 = tpu.matmul %45, %44, %cst_27 {dimension_numbers = #tpu.dot_dimension_numbers<[1], [0], [0], [1], [0, 0, 1, 1], [], []>} : vector<8x256xbf16>, vector<256x256xbf16>, vector<8x256xf32> -> vector<8x256xf32>
    %c0_28 = arith.constant 0 : index
    %c0_29 = arith.constant 0 : index
    %c0_30 = arith.constant 0 : index
    %47 = vector.load %arg10[%c0_28, %c0_29, %c0_30] : memref<1x1x256xf32, #tpu.memory_space<vmem>>, vector<1x1x256xf32>
    %48 = vector.shape_cast %47 : vector<1x1x256xf32> to vector<1x256xf32>
    %49 = vector.broadcast %48 : vector<1x256xf32> to vector<8x256xf32>
    %50 = arith.addf %46, %49 : vector<8x256xf32>
    %c0_31 = arith.constant 0 : index
    %c0_32 = arith.constant 0 : index
    %51 = vector.load %arg13[%c0_31, %c0_32] : memref<8x256xf32, #tpu.memory_space<vmem>>, vector<8x256xf32>
    tpu.vector_store %arg13[%c0_31, %c0_32], %50 {strides = array<i32>} : memref<8x256xf32, #tpu.memory_space<vmem>>, vector<8x256xf32>,
    %c1_i32 = arith.constant 1 : i32
    %52 = arith.cmpi eq, %arg1, %c1_i32 : i32
    %53 = arith.extui %52 : i1 to i32
    %c0_i32_33 = arith.constant 0 : i32
    %54 = arith.cmpi ne, %53, %c0_i32_33 : i32
    scf.if %54 {
      %c0_34 = arith.constant 0 : index
      %c0_35 = arith.constant 0 : index
      %55 = vector.load %arg11[%c0_34, %c0_35] : memref<1x256xf32, #tpu.memory_space<vmem>>, vector<1x256xf32>
      %56 = vector.broadcast %55 : vector<1x256xf32> to vector<8x256xf32>
      %57 = arith.mulf %50, %56 : vector<8x256xf32>
      %58 = math.tanh %57 : vector<8x256xf32>
      %c0_36 = arith.constant 0 : index
      %c0_37 = arith.constant 0 : index
      %59 = vector.load %arg12[%c0_36, %c0_37] : memref<8x256xf32, #tpu.memory_space<vmem>>, vector<8x256xf32>
      tpu.vector_store %arg12[%c0_36, %c0_37], %58 {strides = array<i32>} : memref<8x256xf32, #tpu.memory_space<vmem>>, vector<8x256xf32>,
    } else {
    }
    return
  }
  func.func @transform_0(%arg0: i32, %arg1: i32) -> (i32, i32) {
    %c0_i32 = arith.constant 0 : i32
    %c0_i32_0 = arith.constant 0 : i32
    return %arg0, %c0_i32 : i32, i32
  }
  func.func @transform_1(%arg0: i32, %arg1: i32) -> (i32, i32, i32) {
    %c0_i32 = arith.constant 0 : i32
    %c0_i32_0 = arith.constant 0 : i32
    %c0_i32_1 = arith.constant 0 : i32
    return %arg1, %c0_i32, %c0_i32_0 : i32, i32, i32
  }
  func.func @transform_2(%arg0: i32, %arg1: i32) -> (i32, i32, i32) {
    %c0_i32 = arith.constant 0 : i32
    %c0_i32_0 = arith.constant 0 : i32
    %c0_i32_1 = arith.constant 0 : i32
    return %arg1, %c0_i32, %c0_i32_0 : i32, i32, i32
  }
  func.func @transform_3(%arg0: i32, %arg1: i32) -> (i32, i32, i32) {
    %c0_i32 = arith.constant 0 : i32
    %c0_i32_0 = arith.constant 0 : i32
    %c0_i32_1 = arith.constant 0 : i32
    return %arg1, %c0_i32, %c0_i32_0 : i32, i32, i32
  }
  func.func @transform_4(%arg0: i32, %arg1: i32) -> (i32, i32, i32) {
    %c0_i32 = arith.constant 0 : i32
    %c0_i32_0 = arith.constant 0 : i32
    %c0_i32_1 = arith.constant 0 : i32
    return %arg1, %c0_i32, %c0_i32_0 : i32, i32, i32
  }
  func.func @transform_5(%arg0: i32, %arg1: i32) -> (i32, i32, i32) {
    %c0_i32 = arith.constant 0 : i32
    %c0_i32_0 = arith.constant 0 : i32
    %c0_i32_1 = arith.constant 0 : i32
    return %arg1, %c0_i32, %c0_i32_0 : i32, i32, i32
  }
  func.func @transform_6(%arg0: i32, %arg1: i32) -> (i32, i32, i32) {
    %c0_i32 = arith.constant 0 : i32
    %c0_i32_0 = arith.constant 0 : i32
    %c0_i32_1 = arith.constant 0 : i32
    return %arg1, %c0_i32, %c0_i32_0 : i32, i32, i32
  }
  func.func @transform_7(%arg0: i32, %arg1: i32) -> (i32, i32, i32) {
    %c0_i32 = arith.constant 0 : i32
    %c0_i32_0 = arith.constant 0 : i32
    %c0_i32_1 = arith.constant 0 : i32
    return %arg1, %c0_i32, %c0_i32_0 : i32, i32, i32
  }
  func.func @transform_8(%arg0: i32, %arg1: i32) -> (i32, i32, i32) {
    %c0_i32 = arith.constant 0 : i32
    %c0_i32_0 = arith.constant 0 : i32
    %c0_i32_1 = arith.constant 0 : i32
    return %arg1, %c0_i32, %c0_i32_0 : i32, i32, i32
  }
  func.func @transform_9(%arg0: i32, %arg1: i32) -> (i32, i32) {
    %c0_i32 = arith.constant 0 : i32
    %c0_i32_0 = arith.constant 0 : i32
    %c0_i32_1 = arith.constant 0 : i32
    return %c0_i32, %c0_i32_0 : i32, i32
  }
  func.func @transform_10(%arg0: i32, %arg1: i32) -> (i32, i32) {
    %c0_i32 = arith.constant 0 : i32
    %c0_i32_0 = arith.constant 0 : i32
    return %arg0, %c0_i32 : i32, i32
  }
}

</mosaic_0001>

<bundles_post_ra>
// kernel: resnet_reshape_forward.1
= control target key start
LH: loop header
LB: loop body
LE: loop exit
PB: predicated region body
PF: predicated region fallthrough
CT: control target
= control target key end

     0   :  { %s2956_s0 = inlined_call_operand.vmem [shape: f32[8,256], index: 0, kind: input, shape index: {}, may-alias: {0,10}]   ;;  %s2957_s1 = inlined_call_operand.vmem [shape: f32[2,1,256], index: 1, kind: input, shape index: {}]   ;;  %s2958_s2 = inlined_call_operand.hbm [shape: bf16[2,256,384], index: 2, kind: input, shape index: {}]   ;;  %s2959_s3 = inlined_call_operand.vmem [shape: f32[2,1,384], index: 3, kind: input, shape index: {}]   ;;  %s2960_s4 = inlined_call_operand.vmem [shape: f32[2,1,384], index: 4, kind: input, shape index: {}]   ;;  %s2961_s5 = inlined_call_operand.hbm [shape: bf16[2,384,256], index: 5, kind: input, shape index: {}]   ;;  %s2962_s6 = inlined_call_operand.vmem [shape: f32[2,1,256], index: 6, kind: input, shape index: {}]   ;;  %s2963_s7 = inlined_call_operand.hbm [shape: bf16[2,256,256], index: 7, kind: input, shape index: {}]   ;;  %s2964_s8 = inlined_call_operand.vmem [shape: f32[2,1,256], index: 8, kind: input, shape index: {}]   ;;  %s2965_s9 = inlined_call_operand.vmem [shape: f32[1,256], index: 9, kind: input, shape index: {}]   ;;  %s2966_s10 = inlined_call_operand.vmem [shape: f32[8,256], index: 10, kind: output, shape index: {}, may-alias: {0,10}]  }
   0x1   :  { %2973 = sst [smem:[#allocation13_spill]] %s2958_s2 }
   0x2   :  { %2974 = sst [smem:[#allocation14_spill]] %s2961_s5 }
   0x3   :  { %2975 = sst [smem:[#allocation15_spill]] %s2965_s9 }
   0x4   :  { %2976 = sst [smem:[#allocation16_spill]] %s2966_s10 }
   0x5   :  { %15 = vsyncpa [#allocation4], 0 }
   0x6   :  { %17 = vsyncpa [#allocation4 + $0x1], 0 }
   0x7   :  { %18 = vsyncpa [#allocation6], 0 }
   0x8   :  { %20 = vsyncpa [#allocation6 + $0x1], 0  ;;  %s2586_s13 = smov 0   ;;  %s2588_s14 = smov 0  }
   0x9   :  { %s2590_s15 = smov 0   ;;  %s2592_s16 = smov 0  }
   0xa   :  { %s2594_s17 = smov 0   ;;  %s2596_s18 = smov 0  }
   0xb LB: > { %2977 = sst [smem:[#allocation10_spill]] %s2509_s15  ;;  %s2967_s19 = sadd.s32 4294967295, %s2521_s18   ;;  %s2521_s18 = sphi %s2596_s18, %s26_s18   ;;  %s2517_s17 = sphi %s2594_s17, %s2996_s17   ;;  %s2513_s16 = sphi %s2592_s16, %s2995_s16   ;;  %s2509_s15 = sphi %s2590_s15, %s2991_s15   ;;  %s2505_s14 = sphi %s2588_s14, %s2994_s14   ;;  %s2501_s13 = sphi %s2586_s13, %s2993_s13  }
   0xc   : > { %s35_s20 = sadd.s32 1, %s2517_s17  ;;  %s97_s21 = sadd.s32 1, %s2509_s15 }
   0xd   : > { %p36_p0 = scmp.ge.s32.totalorder %s35_s20, 2  ;;  %p104_p1 = scmp.ne.s32.totalorder %s2509_s15, %s2505_s14 }
   0xe   : > { %p105_p2 = scmp.eq.s32.totalorder %s2521_s18, 0  ;;  %p110_p4 = scmp.ne.s32.totalorder %s2505_s14, %s2501_s13 }
   0xf   : > { %s2998_s20 = smov (%p36_p0, %s35_s20), 0  ;;  %p111_p5 = scmp.eq.s32.totalorder %s2967_s19, 0 }
  0x10   : > { %2978 = sst [smem:[#allocation11_spill]] %s2998_s20  ;;  %p106_p3 = por %p105_p2, %p104_p1 }
  0x11   : > { %s94_s22 = ssub.s32 %s2517_s17, %s2998_s20  ;;  %p2627_p7 = por %p111_p5, %p110_p4 }
  0x12   : > { %p95_p6 = scmp.eq.s32.totalorder %s94_s22, 0  ;;  %p2121_p8 = scmp.lt.s32.totalorder %s2521_s18, 2 }
  0x13   : > { %s2636_s25 = sand.u32 1, %s2509_s15   ;;  %s2100_s26 = smul.u32 6144, %s2517_s17 }
  0x14   : > { %s2633_s24 = scalar_select %p95_p6, %s2509_s15, %s97_s21  }
  0x15   : > { %s2099_s27 = smul.u32 384, %s2636_s25  ;;  %p2640_p9 = pnand %p2121_p8, %p106_p3 }
  0x16   : > { %2980 = sst [smem:[#allocation12_spill]] %s2633_s24  ;;  %s390_s29 = sand.u32 1, %s2521_s18  }
  0x17   : > { %s2982_s5 = sld [smem:[#allocation14_spill]]  ;;  %s394_s13 = scalar_lea.vmem [#allocation5], %s2099_s27 }
  0x18   : > { %s401_s21 = sshll.u32 %s394_s13, 4  ;;  %p1933_p10 = scmp.ge.s32.totalorder %s2521_s18, 1  ;;  %s402_s21 = int_to_ptr.vmem [resolvable:$true] %s401_s21 }
  0x19   : > { %s2653_s22 = scalar_lea.sflag [#allocation6], %s390_s29  ;;  %p2385_p11 = pneg %p2640_p9 }
  0x1a   : > { %s2396_s19 = scalar_lea.vmem %s402_s21, 6144  ;;  %s2523_s20 = smov [#allocation5]  }
  0x1b   : > { %p2397_p12 = scmp.ne.s32.totalorder %s402_s21, %s2396_s19  ;;  %s2401_s24 = sshll.u32 %s2523_s20, 4  ;;  %s2402_s24 = int_to_ptr.vmem [resolvable:$false] %s2401_s24 }
  0x1c   : > { %s2403_s30 = scalar_lea.vmem %s2402_s24, 12288  ;;  %p2404_p1 = scmp.lt.s32.totalorder %s402_s21, %s2402_s24 }
  0x1d   : > { %s400_s12 = scalar_lea.hbm %s2982_s5, %s2100_s26  ;;  %p2399_p13 = pnand %p2397_p12, %p2385_p11 }
  0x1e   : > { %p2405_p2 = scmp.lt.s32.totalorder %s2403_s30, %s2396_s19 }
  0x1f   : > { %p2400_p0 = pneg %p2399_p13 }
  0x20   : > { %p2406_p3 = por %p2405_p2, %p2404_p1 }
  0x22   : > { %p2407_p4 = pnand %p2406_p3, %p2400_p0 }
  0x24   : > { %2410 = shalt.err (!%p2407_p4)
}
  0x25   : > { %s2971_s11 = smov 128   ;;  %s2972_s29 = smov 8  }
  0x26   : > { %2117 = dma.hbm_to_vmem [thread:$0]  (!%p2640_p9), %s400_s12, 6144, %s402_s21, %s2653_s22, %s2971_s11, %s2971_s11, %s2972_s29  }
  0x27   : > { %p444_p5 = scmp.lt.s32.totalorder %s2521_s18, 3  ;;  %s2984_s2 = sld [smem:[#allocation13_spill]] }
  0x28   : > { %s359_s30 = scalar_lea.vmem [#allocation3], %s2099_s27  ;;  %s1930_s15 = sshll.u32 %s2636_s25, 8 }
  0x29   : > { %p2669_p6 = pnand %p1933_p10, %p444_p5  ;;  %s366_s5 = sshll.u32 %s359_s30, 4  ;;  %s367_s5 = int_to_ptr.vmem [resolvable:$true] %s366_s5 }
  0x2a   : > { %s356_s10 = scalar_lea.sflag [#allocation4], %s2636_s25  ;;  %s2424_s9 = scalar_lea.vmem %s367_s5, 6144 }
  0x2b   : > { %p2425_p8 = scmp.ne.s32.totalorder %s367_s5, %s2424_s9  ;;  %s2526_s12 = smov [#allocation3]  }
  0x2c   : > { %s2429_s21 = sshll.u32 %s2526_s12, 4  ;;  %s2430_s21 = int_to_ptr.vmem [resolvable:$false] %s2429_s21 }
  0x2d   : > { %s365_s13 = scalar_lea.hbm %s2984_s2, %s2100_s26  ;;  %p2427_p12 = pnand %p2425_p8, %p2385_p11 }
  0x2e   : > { %s2431_s11 = scalar_lea.vmem %s2430_s21, 12288  ;;  %p2432_p13 = scmp.lt.s32.totalorder %s367_s5, %s2430_s21 }
  0x2f   : > { %p2428_p10 = pneg %p2427_p12  ;;  %p2433_p0 = scmp.lt.s32.totalorder %s2431_s11, %s2424_s9 }
  0x31   : > { %p2434_p1 = por %p2433_p0, %p2432_p13 }
  0x33   : > { %p2435_p2 = pnand %p2434_p1, %p2428_p10 }
  0x35   : > { %2438 = shalt.err (!%p2435_p2)
}
  0x36   : > { %s2527_s26 = smov 192   ;;  %s2528_s25 = smov 12  }
  0x37   : > { %2114 = dma.hbm_to_vmem [thread:$0]  (!%p2640_p9), %s365_s13, 6144, %s367_s5, %s356_s10, %s2527_s26, %s2527_s26, %s2528_s25  }
  0x38   : > { %s2076_s27 = sshll.u32 %s2517_s17, 12  ;;  %s422_s12 = scalar_lea.vmem [#allocation7], %s1930_s15 }
  0x39   : > { %s428_s30 = scalar_lea.hbm %s2963_s7, %s2076_s27  ;;  %s429_s29 = sshll.u32 %s422_s12, 4  ;;  %s430_s29 = int_to_ptr.vmem [resolvable:$true] %s429_s29 }
  0x3a   : > { %s2452_s21 = scalar_lea.vmem %s430_s29, 4096  ;;  %s2529_s9 = smov [#allocation7]  }
  0x3b   : > { %p2453_p3 = scmp.ne.s32.totalorder %s430_s29, %s2452_s21  ;;  %s2457_s11 = sshll.u32 %s2529_s9, 4  ;;  %s2458_s11 = int_to_ptr.vmem [resolvable:$false] %s2457_s11 }
  0x3c   : > { %s2459_s2 = scalar_lea.vmem %s2458_s11, 8192  ;;  %p2460_p8 = scmp.lt.s32.totalorder %s430_s29, %s2458_s11 }
  0x3d   : > { %p2455_p4 = pnand %p2453_p3, %p2385_p11  ;;  %p2461_p12 = scmp.lt.s32.totalorder %s2459_s2, %s2452_s21 }
  0x3f   : > { %p2456_p5 = pneg %p2455_p4  ;;  %p2462_p10 = por %p2461_p12, %p2460_p8 }
  0x41   : > { %p2463_p13 = pnand %p2462_p10, %p2456_p5 }
  0x43   : > { %2466 = shalt.err (!%p2463_p13)
}
  0x44   : > { %s2985_s5 = smov 8   ;;  %s2986_s10 = smov 128  }
  0x45   : > { %2120 = dma.hbm_to_vmem [thread:$0]  (!%p2640_p9), %s428_s30, 4096, %s430_s29, %s2653_s22, %s2986_s10, %s2986_s10, %s2985_s5  }
  0x46   : > { %448 = sbr.rel (%p2669_p6) target bundleno = 847 (0x34f), region = 60  ;;  %s450_s15 = sand.u32 (!%p2669_p6), 1, %s2505_s14  }
  0x47   : > { %s2103_s13 = smul.u32 (!%p2669_p6), 384, %s450_s15  ;;  %s451_s26 = scalar_lea.sflag (!%p2669_p6), [#allocation4], %s450_s15 }
  0x49   : > { %s2703_s25 = scalar_lea.vmem (!%p2669_p6), [#allocation3], %s2103_s13 }
  0x4b   : > { %2492 = dma.done.wait (%p2627_p7), %s451_s26, 6144  }
  0x4c   : > { %2494 = vsyncadd (%p2627_p7), %s451_s26, 4294961152  ;;  %s2987_s2 = sadd.s32 4294967295, %s2521_s18   ;;  %s2711_s29 = scalar_lea.vmem [#allocation5], %s2103_s13 }
  0x4d   : > { %s459_s28 = sand.u32 1, %s2987_s2  }
  0x4e   : > { %s460_s22 = scalar_lea.sflag [#allocation6], %s459_s28 }
  0x4f   : > { %2496 = dma.done.wait (%p2627_p7), %s460_s22, 10240  }
  0x50   : > { %2498 = vsyncadd (%p2627_p7), %s460_s22, 4294957056  ;;  %s1934_s19 = sshll.u32 %s450_s15, 8  ;;  %p549_p9 = scmp.lt.s32.totalorder %s2513_s16, 1 }
  0x51   : > { %s2743_s30 = scalar_lea.vmem [#allocation7], %s1934_s19  ;;  %p1938_p7 = scmp.ne.s32.totalorder %s2513_s16, 0 }
  0x52   : > { %s550_s27 = scalar_select %p549_p9, %s2513_s16, 1 }
  0x53   : > { %578 = sbr.rel (%p1938_p7) target bundleno = 90 (0x5a), region = 76 }
  0x54   : > { %s2719_s20 = sshll.u32 %s550_s27, 1  ;;  %s2104_s24 = smul.u32 3, %s550_s27 }
  0x55   : > { %s552_s21 = scalar_lea.vmem %s2957_s1, %s2719_s20  ;;  %s564_s23 = scalar_lea.vmem %s2962_s6, %s2719_s20 }
  0x56   : > { %s2732_s15 = scalar_lea.vmem %s2959_s3, %s2104_s24  ;;  %s2737_s2 = scalar_lea.vmem %s2960_s4, %s2104_s24 }
  0x57   : > { %s568_s27 = scalar_lea.vmem %s2964_s8, %s2719_s20 }
  0x58   : > { %v579_v0 = vld [vmem:[%s2956_s0] sm:$0xff]  ;;  %v580_v1 = vld [vmem:[%s2956_s0 + $0x8] sm:$0xff] }
  0x59   : > { %581 = vst [vmem:[#allocation2] sm:$0xff] %v579_v0  ;;  %582 = vst [vmem:[#allocation2 + $0x8] sm:$0xff] %v580_v1 }
  0x5a PF: > { %v2175_v2 = vld [vmem:[%s2703_s25 + $0xac] ss:$12 sps:$4 sm:$0xff]   ;;  %v2177_v3 = vld [vmem:[%s2703_s25 + $0xa8] ss:$12 sps:$4 sm:$0xff]   ;;  %v2180_v5 = vld [vmem:[%s2703_s25 + $0x90] ss:$12 sps:$4 sm:$0xff]   ;;  %v652_v26 = vlaneseq }
  0x5b   : > { %952 = vmatprep.subr.bf16.mxu0 %v2175_v2  ;;  %v2178_v4 = vld [vmem:[%s2703_s25 + $0x94] ss:$12 sps:$4 sm:$0xff]   ;;  %v2181_v6 = vld [vmem:[%s2703_s25 + $0x7c] ss:$12 sps:$4 sm:$0xff]   ;;  %v2183_v7 = vld [vmem:[%s2703_s25 + $0x78] ss:$12 sps:$4 sm:$0xff]  }
  0x5c   : > { %953 = vmatpush1.bf16.msra.mxu0 %v2177_v3  ;;  %v2184_v8 = vld [vmem:[%s2703_s25 + $0x64] ss:$12 sps:$4 sm:$0xff]   ;;  %v2186_v9 = vld [vmem:[%s2703_s25 + $0x60] ss:$12 sps:$4 sm:$0xff]   ;;  %v2189_v15 = vld [vmem:[%s2703_s25 + $0x48] ss:$12 sps:$4 sm:$0xff]  }
  0x5d   : > { %954 = vmatprep.subr.bf16.mxu0 %v2178_v4  ;;  %v2196_v10 = vld [vmem:[%s2703_s25 + $0x170] ss:$12 sps:$4 sm:$0xff]   ;;  %v2187_v12 = vld [vmem:[%s2703_s25 + $0x4c] ss:$12 sps:$4 sm:$0xff]   ;;  %v2190_v16 = vld [vmem:[%s2703_s25 + $0x34] ss:$12 sps:$4 sm:$0xff]  }
  0x5e   : > { %v2197_v11 = vld [vmem:[%s2703_s25 + $0xb0] ss:$12 sps:$4 sm:$0xff]   ;;  %2077 = vmatprep.subr.bf16.mxu1 %v2196_v10  ;;  %v2201_v13 = vld [vmem:[%s2703_s25 + $0x158] ss:$12 sps:$4 sm:$0xff]   ;;  %v2206_v17 = vld [vmem:[%s2703_s25 + $0x140] ss:$12 sps:$4 sm:$0xff]  }
  0x5f   : > { %2078 = vmatpush3.bf16.msra.mxu1 %v2197_v11  ;;  %v2202_v14 = vld [vmem:[%s2703_s25 + $0x98] ss:$12 sps:$4 sm:$0xff]   ;;  %v2207_v18 = vld [vmem:[%s2703_s25 + $0x80] ss:$12 sps:$4 sm:$0xff]   ;;  %v2192_v19 = vld [vmem:[%s2703_s25 + $0x30] ss:$12 sps:$4 sm:$0xff]  }
  0x60   : > { %955 = vmatpush1.bf16.msra.mxu0 %v2180_v5  ;;  %2079 = vmatprep.subr.bf16.mxu1 %v2201_v13  ;;  %v2193_v20 = vld [vmem:[%s2703_s25 + $0x1c] ss:$12 sps:$4 sm:$0xff]   ;;  %v2195_v23 = vld [vmem:[%s2703_s25 + $0x18] ss:$12 sps:$4 sm:$0xff]   ;;  %v2200_v29 = vld [vmem:[%s2703_s25] ss:$12 sps:$4 sm:$0xff]  }
  0x61   : > { %956 = vmatprep.subr.bf16.mxu0 %v2181_v6  ;;  %v2211_v21 = vld [vmem:[%s2703_s25 + $0x128] ss:$12 sps:$4 sm:$0xff]   ;;  %v2216_v24 = vld [vmem:[%s2703_s25 + $0x110] ss:$12 sps:$4 sm:$0xff]   ;;  %v2221_v28 = vld [vmem:[%s2703_s25 + $0xf8] ss:$12 sps:$4 sm:$0xff]  }
  0x62   : > { %v2212_v22 = vld [vmem:[%s2703_s25 + $0x68] ss:$12 sps:$4 sm:$0xff]   ;;  %v2198_v25 = vld [vmem:[%s2703_s25 + $0x4] ss:$12 sps:$4 sm:$0xff]   ;;  %v2203_v30 = vld [vmem:[%s2703_s25 + $0x16c] ss:$12 sps:$4 sm:$0xff]  }
  0x63   : > { %2080 = vmatpush3.bf16.msra.mxu1 %v2202_v14  ;;  %v2217_v27 = vld [vmem:[%s2703_s25 + $0x50] ss:$12 sps:$4 sm:$0xff]   ;;  %v2780_v31 = vshrl.u32 %v652_v26, 7  ;;  %v2222_v32 = vld [vmem:[%s2703_s25 + $0x38] ss:$12 sps:$4 sm:$0xff]   ;;  %p2072_p11 = scmp.ne.s32.totalorder %s2513_s16, 1 }
  0x64   : > { %957 = vmatpush1.bf16.msra.mxu0 %v2183_v7  ;;  %2081 = vmatprep.subr.bf16.mxu1 %v2206_v17  ;;  %v2226_v33 = vld [vmem:[%s2703_s25 + $0xe0] ss:$12 sps:$4 sm:$0xff]   ;;  %v2205_v34 = vld [vmem:[%s2703_s25 + $0x168] ss:$12 sps:$4 sm:$0xff]   ;;  %v2210_v40 = vld [vmem:[%s2703_s25 + $0x150] ss:$12 sps:$4 sm:$0xff]  }
  0x65   : > { %958 = vmatprep.subr.bf16.mxu0 %v2184_v8  ;;  %v2208_v35 = vld [vmem:[%s2703_s25 + $0x154] ss:$12 sps:$4 sm:$0xff]   ;;  %v2787_v36 = vsub.s32 0, %v2780_v31  ;;  %v2790_v37 = vsub.s32 1, %v2780_v31  ;;  %v2213_v41 = vld [vmem:[%s2703_s25 + $0x13c] ss:$12 sps:$4 sm:$0xff]  }
  0x66   : > { %v2227_v38 = vld [vmem:[%s2703_s25 + $0x20] ss:$12 sps:$4 sm:$0xff]   ;;  %v2231_v39 = vld [vmem:[%s2703_s25 + $0xc8] ss:$12 sps:$4 sm:$0xff]   ;;  %v2796_v42 = vld [vmem:[#allocation2 + $0x8] sm:$0xff]  ;;  %s2988_s13 = sld [smem:[#allocation15_spill]] (!%p2072_p11) }
  0x67   : > { %2082 = vmatpush3.bf16.msra.mxu1 %v2207_v18  ;;  %v585_v43 = vld [vmem:[%s552_s21] sm:$0x3]  ;;  %v2232_v45 = vld [vmem:[%s2703_s25 + $0x8] ss:$12 sps:$4 sm:$0xff]   ;;  %v2215_v48 = vld [vmem:[%s2703_s25 + $0x138] ss:$12 sps:$4 sm:$0xff]  }
  0x68   : > { %959 = vmatpush1.bf16.msra.mxu0 %v2186_v9  ;;  %2083 = vmatprep.subr.bf16.mxu1 %v2211_v21  ;;  %v2803_v44 = vld [vmem:[#allocation2] sm:$0xff]  ;;  %v655_v46 = vrot.slane %v585_v43, %v2787_v36  ;;  %v659_v47 = vrot.slane %v585_v43, %v2790_v37  ;;  %v2220_v55 = vld [vmem:[%s2703_s25 + $0x120] ss:$12 sps:$4 sm:$0xff]   ;;  %v2233_v60 = vld [vmem:[%s2703_s25 + $0xdc] ss:$12 sps:$4 sm:$0xff]  }
  0x69   : > { %960 = vmatprep.subr.bf16.mxu0 %v2187_v12  ;;  %v2241_v51 = vld [vmem:[%s2711_s29 + $0x74] ss:$8 sps:$4 sm:$0xff]   ;;  %v2218_v52 = vld [vmem:[%s2703_s25 + $0x124] ss:$12 sps:$4 sm:$0xff]   ;;  %v2223_v56 = vld [vmem:[%s2703_s25 + $0x10c] ss:$12 sps:$4 sm:$0xff]  }
  0x6a   : > { %v663_v49 = vmul.f32 %v659_v47, %v2796_v42  ;;  %v662_v50 = vmul.f32 %v655_v46, %v2803_v44  ;;  %v2225_v57 = vld [vmem:[%s2703_s25 + $0x108] ss:$12 sps:$4 sm:$0xff]   ;;  %v2230_v59 = vld [vmem:[%s2703_s25 + $0xf0] ss:$12 sps:$4 sm:$0xff]   ;;  %v2235_v61 = vld [vmem:[%s2703_s25 + $0xd8] ss:$12 sps:$4 sm:$0xff]  }
  0x6b   : > { %2084 = vmatpush3.bf16.msra.mxu1 %v2212_v22  ;;  %v2228_v58 = vld [vmem:[%s2703_s25 + $0xf4] ss:$12 sps:$4 sm:$0xff]   ;;  %v2236_v62 = vld [vmem:[%s2703_s25 + $0xc4] ss:$12 sps:$4 sm:$0xff]  }
  0x6c   : > { %961 = vmatpush1.bf16.msra.mxu0 %v2189_v15  ;;  %2085 = vmatprep.subr.bf16.mxu1 %v2216_v24  ;;  %v1940_v53 = vmul.f32 -1.442695, %v663_v49  ;;  %v1939_v54 = vmul.f32 -1.442695, %v662_v50  ;;  %v2238_v2 = vld [vmem:[%s2703_s25 + $0xc0] ss:$12 sps:$4 sm:$0xff]  }
  0x6d   : > { %962 = vmatprep.subr.bf16.mxu0 %v2190_v16  ;;  %v2239_v9 = vld [vmem:[%s2711_s29 + $0x70] ss:$8 sps:$4 sm:$0xff]   ;;  %v2244_v11 = vld [vmem:[%s2711_s29 + $0x64] ss:$8 sps:$4 sm:$0xff]   ;;  %v2242_v12 = vld [vmem:[%s2711_s29 + $0x60] ss:$8 sps:$4 sm:$0xff]  }
  0x6e   : > { %2359 = vpow2.f32 %v1940_v53  ;;  %v2247_v13 = vld [vmem:[%s2711_s29 + $0x54] ss:$8 sps:$4 sm:$0xff]   ;;  %v2245_v14 = vld [vmem:[%s2711_s29 + $0x50] ss:$8 sps:$4 sm:$0xff]   ;;  %v2250_v15 = vld [vmem:[%s2711_s29 + $0x44] ss:$8 sps:$4 sm:$0xff]  }
  0x6f   : > { %2086 = vmatpush3.bf16.msra.mxu1 %v2217_v27  ;;  %2361 = vpow2.f32 %v1939_v54  ;;  %v2248_v16 = vld [vmem:[%s2711_s29 + $0x40] ss:$8 sps:$4 sm:$0xff]   ;;  %v2253_v17 = vld [vmem:[%s2711_s29 + $0x34] ss:$8 sps:$4 sm:$0xff]   ;;  %v2251_v18 = vld [vmem:[%s2711_s29 + $0x30] ss:$8 sps:$4 sm:$0xff]  }
  0x70   : > { %963 = vmatpush1.bf16.msra.mxu0 %v2192_v19  ;;  %2087 = vmatprep.subr.bf16.mxu1 %v2221_v28  ;;  %v2256_v19 = vld [vmem:[%s2711_s29 + $0x24] ss:$8 sps:$4 sm:$0xff]   ;;  %v2259_v21 = vld [vmem:[%s2711_s29 + $0x14] ss:$8 sps:$4 sm:$0xff]   ;;  %v2257_v22 = vld [vmem:[%s2711_s29 + $0x10] ss:$8 sps:$4 sm:$0xff]  }
  0x71   : > { %964 = vmatprep.subr.bf16.mxu0 %v2193_v20  ;;  %v2254_v20 = vld [vmem:[%s2711_s29 + $0x20] ss:$8 sps:$4 sm:$0xff]   ;;  %v2263_v26 = vld [vmem:[%s2711_s29 + $0xf0] ss:$8 sps:$4 sm:$0xff]   ;;  %v2268_v27 = vld [vmem:[%s2711_s29 + $0xe4] ss:$8 sps:$4 sm:$0xff]  }
  0x72   : > { %v2260_v24 = vld [vmem:[%s2711_s29] ss:$8 sps:$4 sm:$0xff]   ;;  %v2289_v46 = vld [vmem:[%s2711_s29 + $0x174] ss:$8 sps:$4 sm:$0xff]   ;;  %v2311_v47 = vld [vmem:[%s2743_s30 + $0x70] ss:$8 sps:$4 sm:$0xff]  }
  0x73   : > { %2088 = vmatpush3.bf16.msra.mxu1 %v2222_v32  ;;  %v2266_v28 = vld [vmem:[%s2711_s29 + $0xe0] ss:$8 sps:$4 sm:$0xff]   ;;  %v2274_v32 = vld [vmem:[%s2711_s29 + $0xc4] ss:$8 sps:$4 sm:$0xff]  }
  0x74   : > { %965 = vmatpush1.bf16.msra.mxu0 %v2195_v23  ;;  %2089 = vmatprep.subr.bf16.mxu1 %v2226_v33  ;;  %v2262_v23 = vld [vmem:[%s2711_s29 + $0x4] ss:$8 sps:$4 sm:$0xff]   ;;  %v2272_v33 = vld [vmem:[%s2711_s29 + $0xc0] ss:$8 sps:$4 sm:$0xff]  }
  0x75   : > { %966 = vmatprep.subr.bf16.mxu0 %v2198_v25  ;;  %v2265_v25 = vld [vmem:[%s2711_s29 + $0xf4] ss:$8 sps:$4 sm:$0xff]   ;;  %v2284_v43 = vld [vmem:[%s2711_s29 + $0x80] ss:$8 sps:$4 sm:$0xff]   ;;  %v2316_v49 = vld [vmem:[%s2743_s30 + $0x64] ss:$8 sps:$4 sm:$0xff]  }
  0x76   : > { %v2314_v50 = vld [vmem:[%s2743_s30 + $0x60] ss:$8 sps:$4 sm:$0xff]   ;;  %v2322_v53 = vld [vmem:[%s2743_s30 + $0x44] ss:$8 sps:$4 sm:$0xff]  }
  0x77   : > { %2090 = vmatpush3.bf16.msra.mxu1 %v2227_v38  ;;  %v2280_v38 = vld [vmem:[%s2711_s29 + $0xa4] ss:$8 sps:$4 sm:$0xff]   ;;  %v2320_v54 = vld [vmem:[%s2743_s30 + $0x40] ss:$8 sps:$4 sm:$0xff]  }
  0x78   : > { %967 = vmatpush1.bf16.msra.mxu0 %v2200_v29  ;;  %2091 = vmatprep.subr.bf16.mxu1 %v2231_v39  ;;  %v2271_v29 = vld [vmem:[%s2711_s29 + $0xd4] ss:$8 sps:$4 sm:$0xff]   ;;  %v2278_v39 = vld [vmem:[%s2711_s29 + $0xa0] ss:$8 sps:$4 sm:$0xff]  }
  0x79   : > { %968 = vmatprep.subr.bf16.mxu0 %v2203_v30  ;;  %v2269_v30 = vld [vmem:[%s2711_s29 + $0xd0] ss:$8 sps:$4 sm:$0xff]  }
  0x7b   : > { %2092 = vmatpush3.bf16.msra.mxu1 %v2232_v45  ;;  %v2360_v63 = vpop.eup %2359  ;;  %v2286_v45 = vld [vmem:[%s2711_s29 + $0x84] ss:$8 sps:$4 sm:$0xff]  }
  0x7c   : > { %969 = vmatpush2.bf16.msra.mxu0 %v2205_v34  ;;  %1377 = vmatprep.subr.bf16.mxu1 %v2241_v51  ;;  %v2362_v0 = vpop.eup %2361  ;;  %v671_v1 = vadd.f32 1.0, %v2360_v63  ;;  %v2277_v34 = vld [vmem:[%s2711_s29 + $0xb4] ss:$8 sps:$4 sm:$0xff]  }
  0x7d   : > { %970 = vmatprep.subr.bf16.mxu0 %v2208_v35  ;;  %v670_v3 = vadd.f32 1.0, %v2362_v0  ;;  %v2275_v35 = vld [vmem:[%s2711_s29 + $0xb0] ss:$8 sps:$4 sm:$0xff]   ;;  %v2319_v51 = vld [vmem:[%s2743_s30 + $0x54] ss:$8 sps:$4 sm:$0xff]  }
  0x7e   : > { %2363 = vrcp.f32 %v671_v1 }
  0x7f   : > { %2365 = vrcp.f32 %v670_v3 }
  0x80   : > { %971 = vmatpush2.bf16.msra.mxu0 %v2210_v40  ;;  %v2283_v40 = vld [vmem:[%s2711_s29 + $0x94] ss:$8 sps:$4 sm:$0xff]  }
  0x81   : > { %972 = vmatprep.subr.bf16.mxu0 %v2213_v41  ;;  %v2281_v41 = vld [vmem:[%s2711_s29 + $0x90] ss:$8 sps:$4 sm:$0xff]  }
  0x84   : > { %973 = vmatpush2.bf16.msra.mxu0 %v2215_v48  ;;  %v2313_v48 = vld [vmem:[%s2743_s30 + $0x74] ss:$8 sps:$4 sm:$0xff]  }
  0x85   : > { %974 = vmatprep.subr.bf16.mxu0 %v2218_v52  ;;  %v2317_v52 = vld [vmem:[%s2743_s30 + $0x50] ss:$8 sps:$4 sm:$0xff]  }
  0x88   : > { %975 = vmatpush2.bf16.msra.mxu0 %v2220_v55  ;;  %v2325_v55 = vld [vmem:[%s2743_s30 + $0x34] ss:$8 sps:$4 sm:$0xff]  }
  0x89   : > { %976 = vmatprep.subr.bf16.mxu0 %v2223_v56  ;;  %v2323_v56 = vld [vmem:[%s2743_s30 + $0x30] ss:$8 sps:$4 sm:$0xff]  }
  0x8b   : > { %v2364_v4 = vpop.eup %2363 }
  0x8c   : > { %977 = vmatpush2.bf16.msra.mxu0 %v2225_v57  ;;  %v2366_v5 = vpop.eup %2365  ;;  %v677_v6 = vmul.f32 %v2364_v4, %v2796_v42  ;;  %v2328_v57 = vld [vmem:[%s2743_s30 + $0x24] ss:$8 sps:$4 sm:$0xff]  }
  0x8d   : > { %978 = vmatprep.subr.bf16.mxu0 %v2228_v58  ;;  %v676_v7 = vmul.f32 %v2366_v5, %v2803_v44  ;;  %v2326_v58 = vld [vmem:[%s2743_s30 + $0x20] ss:$8 sps:$4 sm:$0xff]  }
  0x8e   : > { %v679_v8 = vpack.c.bf16 %v677_v6, %v677_v6 }
  0x8f   : > { %v678_v10 = vpack.c.bf16 %v676_v7, %v676_v7 }
  0x90   : > { %979 = vmatpush2.bf16.msra.mxu0 %v2230_v59  ;;  %1025 = vmatprep.mubr.bf16.mxu1 %v679_v8  ;;  %v650_v59 = vld [vmem:[%s2732_s15] sm:$0x7] }
  0x91   : > { %980 = vmatprep.subr.bf16.mxu0 %v2233_v60  ;;  %984 = vmatprep.mubr.bf16.mxu0 %v679_v8  ;;  %v684_v60 = vrot.slane %v650_v59, %v2787_v36  ;;  %v688_v63 = vrot.slane %v650_v59, %v2790_v37 }
  0x92   : > { %1026 = vmatmul.mubr.bf16.vlgmr.msra.gmra.mxu1 %v678_v10 }
  0x93   : > { %1378 = vmatpush1.bf16.msra.mxu1 %v2239_v9 }
  0x94   : > { %981 = vmatpush2.bf16.msra.mxu0 %v2235_v61  ;;  %1379 = vmatprep.subr.bf16.mxu1 %v2244_v11  ;;  %v1033_v61 = vld [vmem:[%s2737_s2] sm:$0x7]  ;;  %s2989_s2 = sld [smem:[#allocation16_spill]] (!%p2072_p11) }
  0x95   : > { %982 = vmatprep.subr.bf16.mxu0 %v2236_v62  ;;  %v1087_v62 = vrot.slane %v1033_v61, %v2787_v36  ;;  %v1091_v3 = vrot.slane %v1033_v61, %v2790_v37 }
  0x97   : > { %1380 = vmatpush1.bf16.msra.mxu1 %v2242_v12 }
  0x98   : > { %983 = vmatpush2.bf16.msra.mxu0 %v2238_v2  ;;  %1381 = vmatprep.subr.bf16.mxu1 %v2247_v13 }
  0x99   : > { %1669 = vmatprep.subr.bf16.mxu0 %v2313_v48  ;;  %v2304_v48 = vld [vmem:[%s2711_s29 + $0x124] ss:$8 sps:$4 sm:$0xff]  }
  0x9b   : > { %985 = vmatmul.mubr.bf16.vlgmr.msra.gmra.mxu0 %v678_v10  ;;  %1382 = vmatpush1.bf16.msra.mxu1 %v2245_v14 }
  0x9c   : > { %1383 = vmatprep.subr.bf16.mxu1 %v2250_v15  ;;  %1670 = vmatpush1.bf16.msra.mxu0 %v2311_v47  ;;  %v691_v15 = vsub.s32 2, %v2780_v31  ;;  %v2299_v47 = vld [vmem:[%s2711_s29 + $0x130] ss:$8 sps:$4 sm:$0xff]  }
  0x9d   : > { %1671 = vmatprep.subr.bf16.mxu0 %v2316_v49  ;;  %v2302_v49 = vld [vmem:[%s2711_s29 + $0x120] ss:$8 sps:$4 sm:$0xff]  }
  0x9f   : > { %1384 = vmatpush1.bf16.msra.mxu1 %v2248_v16  ;;  %v692_v16 = vrot.slane %v650_v59, %v691_v15  ;;  %v2332_v59 = vld [vmem:[%s2743_s30] ss:$8 sps:$4 sm:$0xff]  }
  0xa0   : > { %1385 = vmatprep.subr.bf16.mxu1 %v2253_v17  ;;  %1672 = vmatpush1.bf16.msra.mxu0 %v2314_v50  ;;  %v2307_v50 = vld [vmem:[%s2711_s29 + $0x114] ss:$8 sps:$4 sm:$0xff]  }
  0xa1   : > { %1673 = vmatprep.subr.bf16.mxu0 %v2319_v51  ;;  %v2305_v51 = vld [vmem:[%s2711_s29 + $0x110] ss:$8 sps:$4 sm:$0xff]  }
  0xa3   : > { %1386 = vmatpush1.bf16.msra.mxu1 %v2251_v18 }
  0xa4   : > { %1387 = vmatprep.subr.bf16.mxu1 %v2256_v19  ;;  %1674 = vmatpush1.bf16.msra.mxu0 %v2317_v52  ;;  %v2310_v52 = vld [vmem:[%s2711_s29 + $0x104] ss:$8 sps:$4 sm:$0xff]  }
  0xa5   : > { %1675 = vmatprep.subr.bf16.mxu0 %v2322_v53 }
  0xa7   : > { %1388 = vmatpush1.bf16.msra.mxu1 %v2254_v20 }
  0xa8   : > { %1389 = vmatprep.subr.bf16.mxu1 %v2259_v21  ;;  %1676 = vmatpush1.bf16.msra.mxu0 %v2320_v54  ;;  %v2308_v54 = vld [vmem:[%s2711_s29 + $0x100] ss:$8 sps:$4 sm:$0xff]  }
  0xa9   : > { %1677 = vmatprep.subr.bf16.mxu0 %v2325_v55 }
  0xab   : > { %1390 = vmatpush1.bf16.msra.mxu1 %v2257_v22  ;;  %v1095_v22 = vrot.slane %v1033_v61, %v691_v15  ;;  %v2337_v61 = vld [vmem:[%s2743_s30 + $0xf4] ss:$8 sps:$4 sm:$0xff]  }
  0xac   : > { %1391 = vmatprep.subr.bf16.mxu1 %v2262_v23  ;;  %1678 = vmatpush1.bf16.msra.mxu0 %v2323_v56 }
  0xad   : > { %1679 = vmatprep.subr.bf16.mxu0 %v2328_v57  ;;  %v2329_v57 = vld [vmem:[%s2743_s30 + $0x10] ss:$8 sps:$4 sm:$0xff]  }
  0xaf   : > { %1392 = vmatpush1.bf16.msra.mxu1 %v2260_v24 }
  0xb0   : > { %1393 = vmatprep.subr.bf16.mxu1 %v2265_v25  ;;  %1680 = vmatpush1.bf16.msra.mxu0 %v2326_v58  ;;  %v2331_v58 = vld [vmem:[%s2743_s30 + $0x14] ss:$8 sps:$4 sm:$0xff]  }
  0xb1   : > { %1681 = vmatprep.subr.bf16.mxu0 %v2331_v58 }
  0xb3   : > { %1394 = vmatpush2.bf16.msra.mxu1 %v2263_v26 }
  0xb4   : > { %1395 = vmatprep.subr.bf16.mxu1 %v2268_v27  ;;  %1682 = vmatpush1.bf16.msra.mxu0 %v2329_v57 }
  0xb7   : > { %1396 = vmatpush2.bf16.msra.mxu1 %v2266_v28 }
  0xb8   : > { %1397 = vmatprep.subr.bf16.mxu1 %v2271_v29 }
  0xbb   : > { %1398 = vmatpush2.bf16.msra.mxu1 %v2269_v30  ;;  %v2287_v30 = vld [vmem:[%s2711_s29 + $0x170] ss:$8 sps:$4 sm:$0xff]  }
  0xbc   : > { %1399 = vmatprep.subr.bf16.mxu1 %v2274_v32 }
  0xbf   : > { %1400 = vmatpush2.bf16.msra.mxu1 %v2272_v33  ;;  %v2292_v33 = vld [vmem:[%s2711_s29 + $0x164] ss:$8 sps:$4 sm:$0xff]  }
  0xc0   : > { %1401 = vmatprep.subr.bf16.mxu1 %v2277_v34  ;;  %v2290_v34 = vld [vmem:[%s2711_s29 + $0x160] ss:$8 sps:$4 sm:$0xff]  }
  0xc3   : > { %1402 = vmatpush2.bf16.msra.mxu1 %v2275_v35  ;;  %v2530_v35 = vmov 0  }
  0xc4   : > { %1403 = vmatprep.subr.bf16.mxu1 %v2280_v38  ;;  %v2295_v38 = vld [vmem:[%s2711_s29 + $0x154] ss:$8 sps:$4 sm:$0xff]  }
  0xc7   : > { %1404 = vmatpush2.bf16.msra.mxu1 %v2278_v39 }
  0xc8   : > { %1405 = vmatprep.subr.bf16.mxu1 %v2283_v40  ;;  %v2293_v40 = vld [vmem:[%s2711_s29 + $0x150] ss:$8 sps:$4 sm:$0xff]  }
  0xcb   : > { %1406 = vmatpush2.bf16.msra.mxu1 %v2281_v41 }
  0xcc   : > { %1407 = vmatprep.subr.bf16.mxu1 %v2286_v45  ;;  %v2296_v45 = vld [vmem:[%s2711_s29 + $0x140] ss:$8 sps:$4 sm:$0xff]  }
  0xcf   : > { %1408 = vmatpush2.bf16.msra.mxu1 %v2284_v43  ;;  %v2298_v43 = vld [vmem:[%s2711_s29 + $0x144] ss:$8 sps:$4 sm:$0xff]  }
  0xd0   : > { %1418 = vmatprep.subr.bf16.mxu1 %v2289_v46  ;;  %v2301_v46 = vld [vmem:[%s2711_s29 + $0x134] ss:$8 sps:$4 sm:$0xff]  }
 0x152   : > { %v2093_v0 = vpop.f32.mrf.mxu1 }
 0x154   : > { %v2094_v4 = vpop.f32.mrf.mxu1 }
 0x155   : > { %v2095_v17 = vadd.f32 %v2094_v4, %v2093_v0  ;;  %v2338_v0 = vld [vmem:[%s2743_s30 + $0xe0] ss:$8 sps:$4 sm:$0xff]  }
 0x156   : > { %v2096_v9 = vpop.f32.mrf.mxu1  ;;  %v2344_v4 = vld [vmem:[%s2743_s30 + $0xc0] ss:$8 sps:$4 sm:$0xff]  }
 0x157   : > { %v1028_v21 = vadd.f32 %v2095_v17, %v692_v16  ;;  %v2355_v9 = vld [vmem:[%s2743_s30 + $0x94] ss:$8 sps:$4 sm:$0xff]   ;;  %v1082_v17 = vld [vmem:[%s564_s23] sm:$0x3] }
 0x158   : > { %v2097_v13 = vpop.f32.mrf.mxu1 }
 0x159   : > { %v1101_v24 = vmul.f32 %v1095_v22, %v1028_v21 }
 0x15b   : > { %v986_v1 = vpop.f32.mrf.mxu0  ;;  %v1991_v25 = vmul.f32 -1.442695, %v1101_v24 }
 0x15c   : > { %v987_v2 = vadd.f32 %v986_v1, %v684_v60  ;;  %v2334_v60 = vld [vmem:[%s2743_s30 + $0x4] ss:$8 sps:$4 sm:$0xff]   ;;  %v2343_v1 = vld [vmem:[%s2743_s30 + $0xd4] ss:$8 sps:$4 sm:$0xff]  }
 0x15d   : > { %v988_v5 = vpop.f32.mrf.mxu0  ;;  %1683 = vmatprep.subr.bf16.mxu0 %v2334_v60 }
 0x15e   : > { %v1099_v6 = vmul.f32 %v1087_v62, %v987_v2  ;;  %v989_v7 = vadd.f32 %v988_v5, %v688_v63  ;;  %1684 = vmatpush1.bf16.msra.mxu0 %v2332_v59  ;;  %v2335_v62 = vld [vmem:[%s2743_s30 + $0xf0] ss:$8 sps:$4 sm:$0xff]   ;;  %v2340_v63 = vld [vmem:[%s2743_s30 + $0xe4] ss:$8 sps:$4 sm:$0xff]   ;;  %v2349_v5 = vld [vmem:[%s2743_s30 + $0xb4] ss:$8 sps:$4 sm:$0xff]  }
 0x15f   : > { %v990_v8 = vpop.f32.mrf.mxu0  ;;  %1685 = vmatprep.subr.bf16.mxu0 %v2337_v61 }
 0x160   : > { %v1989_v10 = vmul.f32 -1.442695, %v1099_v6  ;;  %v1100_v11 = vmul.f32 %v1091_v3, %v989_v7  ;;  %v2346_v3 = vld [vmem:[%s2743_s30 + $0xc4] ss:$8 sps:$4 sm:$0xff]   ;;  %v2347_v6 = vld [vmem:[%s2743_s30 + $0xb0] ss:$8 sps:$4 sm:$0xff]  }
 0x161   : > { %v991_v12 = vpop.f32.mrf.mxu0  ;;  %v2350_v8 = vld [vmem:[%s2743_s30 + $0xa0] ss:$8 sps:$4 sm:$0xff]  }
 0x162   : > { %2367 = vpow2.f32 %v1989_v10  ;;  %v1990_v14 = vmul.f32 -1.442695, %v1100_v11  ;;  %1686 = vmatpush2.bf16.msra.mxu0 %v2335_v62  ;;  %v2353_v10 = vld [vmem:[%s2743_s30 + $0x90] ss:$8 sps:$4 sm:$0xff]   ;;  %v2358_v11 = vld [vmem:[%s2743_s30 + $0x84] ss:$8 sps:$4 sm:$0xff]  }
 0x163   : > { %1687 = vmatprep.subr.bf16.mxu0 %v2340_v63  ;;  %v2356_v12 = vld [vmem:[%s2743_s30 + $0x80] ss:$8 sps:$4 sm:$0xff]  }
 0x164   : > { %2369 = vpow2.f32 %v1990_v14 }
 0x166   : > { %1688 = vmatpush2.bf16.msra.mxu0 %v2338_v0 }
 0x167   : > { %1689 = vmatprep.subr.bf16.mxu0 %v2343_v1 }
 0x16f   : > { %v2368_v18 = vpop.eup %2367 }
 0x170   : > { %v1111_v19 = vadd.f32 1.0, %v2368_v18  ;;  %v1130_v18 = vrot.slane %v1082_v17, %v2787_v36 }
 0x171   : > { %v2370_v20 = vpop.eup %2369 }
 0x172   : > { %2371 = vrcp.f32 %v1111_v19  ;;  %v1112_v23 = vadd.f32 1.0, %v2370_v20  ;;  %v1134_v19 = vrot.slane %v1082_v17, %v2790_v37 }
 0x174   : > { %2373 = vrcp.f32 %v1112_v23 }
 0x175   : > { %2375 = vpow2.f32 %v1991_v25 }
 0x17f   : > { %v2372_v26 = vpop.eup %2371 }
 0x180   : > { %v1120_v31 = vmul.f32 %v2372_v26, %v987_v2  ;;  %v2341_v2 = vld [vmem:[%s2743_s30 + $0xd0] ss:$8 sps:$4 sm:$0xff]  }
 0x181   : > { %v2374_v27 = vpop.eup %2373  ;;  %1690 = vmatpush2.bf16.msra.mxu0 %v2341_v2 }
 0x182   : > { %v1121_v28 = vmul.f32 %v2374_v27, %v989_v7  ;;  %v1123_v32 = vpack.c.bf16 %v1120_v31, %v1120_v31  ;;  %v2376_v39 = vpop.eup %2375  ;;  %1691 = vmatprep.subr.bf16.mxu0 %v2346_v3  ;;  %v2352_v7 = vld [vmem:[%s2743_s30 + $0xa4] ss:$8 sps:$4 sm:$0xff]  }
 0x183   : > { %v1113_v41 = vadd.f32 1.0, %v2376_v39 }
 0x184   : > { %v1124_v29 = vpack.c.bf16 %v1121_v28, %v1121_v28 }
 0x185   : > { %2377 = vrcp.f32 %v1113_v41  ;;  %1692 = vmatpush2.bf16.msra.mxu0 %v2344_v4 }
 0x186   : > { %1409 = vmatprep.mubr.bf16.mxu1 %v1124_v29  ;;  %1693 = vmatprep.subr.bf16.mxu0 %v2349_v5 }
 0x187   : > { %1410 = vmatmul.mubr.bf16.vlgmr.msra.gmra.mxu1 %v1123_v32 }
 0x188   : > { %1419 = vmatpush1.bf16.msra.mxu1 %v2287_v30  ;;  %1450 = vmatprep.mubr.bf16.mxu1 %v2530_v35 }
 0x189   : > { %1420 = vmatprep.subr.bf16.mxu1 %v2292_v33  ;;  %1694 = vmatpush2.bf16.msra.mxu0 %v2347_v6 }
 0x18a   : > { %1695 = vmatprep.subr.bf16.mxu0 %v2352_v7 }
 0x18c   : > { %1421 = vmatpush1.bf16.msra.mxu1 %v2290_v34  ;;  %v1497_v34 = vld [vmem:[%s568_s27] sm:$0x3] }
 0x18d   : > { %1422 = vmatprep.subr.bf16.mxu1 %v2295_v38  ;;  %1696 = vmatpush2.bf16.msra.mxu0 %v2350_v8  ;;  %v1502_v35 = vrot.slane %v1497_v34, %v2787_v36 }
 0x18e   : > { %1697 = vmatprep.subr.bf16.mxu0 %v2355_v9 }
 0x190   : > { %1423 = vmatpush1.bf16.msra.mxu1 %v2293_v40 }
 0x191   : > { %1424 = vmatprep.subr.bf16.mxu1 %v2298_v43  ;;  %1698 = vmatpush2.bf16.msra.mxu0 %v2353_v10 }
 0x192   : > { %v2378_v53 = vpop.eup %2377  ;;  %1699 = vmatprep.subr.bf16.mxu0 %v2358_v11 }
 0x193   : > { %v1122_v55 = vmul.f32 %v2378_v53, %v1028_v21 }
 0x194   : > { %1425 = vmatpush1.bf16.msra.mxu1 %v2296_v45 }
 0x195   : > { %1426 = vmatprep.subr.bf16.mxu1 %v2301_v46  ;;  %v1125_v56 = vpack.c.bf16 %v1122_v55, %v1122_v55  ;;  %1700 = vmatpush2.bf16.msra.mxu0 %v2356_v12 }
 0x198   : > { %1427 = vmatpush1.bf16.msra.mxu1 %v2299_v47 }
 0x199   : > { %1428 = vmatprep.subr.bf16.mxu1 %v2304_v48 }
 0x19c   : > { %1429 = vmatpush1.bf16.msra.mxu1 %v2302_v49 }
 0x19d   : > { %1430 = vmatprep.subr.bf16.mxu1 %v2307_v50 }
 0x1a0   : > { %1431 = vmatpush1.bf16.msra.mxu1 %v2305_v51 }
 0x1a1   : > { %1432 = vmatprep.subr.bf16.mxu1 %v2310_v52 }
 0x1a4   : > { %1433 = vmatpush1.bf16.msra.mxu1 %v2308_v54 }
 0x1a7   : > { %1451 = vmatmul.mubr.bf16.vlgmr.msra.gmra.mxu1 %v1125_v56 }
 0x247   : > { %v1411_v13 = vpop.f32.mrf.mxu1 }
 0x248   : > { %v1412_v20 = vadd.f32 %v1411_v13, %v1130_v18 }
 0x249   : > { %v1413_v14 = vpop.f32.mrf.mxu1 }
 0x24a   : > { %v1414_v22 = vadd.f32 %v1413_v14, %v1134_v19 }
 0x24b   : > { %v1415_v15 = vpop.f32.mrf.mxu1 }
 0x24d   : > { %v1416_v16 = vpop.f32.mrf.mxu1 }
 0x267   : > { %v1452_v21 = vpop.f32.mrf.mxu1 }
 0x268   : > { %v1453_v23 = vadd.f32 %v1452_v21, %v1412_v20 }
 0x269   : > { %v1454_v24 = vpop.f32.mrf.mxu1 }
 0x26a   : > { %v1459_v25 = vadd.f32 %v1453_v23, %v2803_v44  ;;  %v1455_v26 = vadd.f32 %v1454_v24, %v1414_v22  ;;  %v1506_v44 = vrot.slane %v1497_v34, %v2790_v37 }
 0x26b   : > { %v1456_v27 = vpop.f32.mrf.mxu1 }
 0x26c   : > { %v1460_v31 = vadd.f32 %v1455_v26, %v2796_v42  ;;  %v1461_v28 = vmul.f32 0.70710677, %v1459_v25 }
 0x26d   : > { %v1457_v29 = vpop.f32.mrf.mxu1 }
 0x26e   : > { %v1462_v30 = vmul.f32 0.70710677, %v1460_v31  ;;  %v1495_v33 = vpack.c.bf16 %v1461_v28, %v1461_v28 }
 0x270   : > { %v1496_v32 = vpack.c.bf16 %v1462_v30, %v1462_v30 }
 0x272   : > { %1701 = vmatprep.mubr.bf16.mxu0 %v1496_v32 }
 0x273   : > { %1702 = vmatmul.mubr.bf16.vlgmr.msra.gmra.mxu0 %v1495_v33 }
 0x333   : > { %v1703_v38 = vpop.f32.mrf.mxu0 }
 0x334   : > { %v1704_v39 = vadd.f32 %v1703_v38, %v1502_v35 }
 0x335   : > { %v1705_v40 = vpop.f32.mrf.mxu0  ;;  %1715 = sbr.rel (%p2072_p11) target bundleno = 847 (0x34f), region = 80 }
 0x336   : > { %1710 = vst [vmem:[#allocation2] sm:$0xff] %v1704_v39  ;;  %v1706_v42 = vadd.f32 %v1705_v40, %v1506_v44 }
 0x337   : > { %v1707_v41 = vpop.f32.mrf.mxu0 }
 0x338   : > { %1711 = vst [vmem:[#allocation2 + $0x8] sm:$0xff] %v1706_v42 }
 0x339   : > { %v1708_v43 = vpop.f32.mrf.mxu0 }
 0x33a   : > { %v1716_v45 = vld [vmem:[%s2988_s13] sm:$0x3] }
 0x33b   : > { %v1721_v46 = vrot.slane %v1716_v45, %v2787_v36  ;;  %v1725_v47 = vrot.slane %v1716_v45, %v2790_v37 }
 0x33d   : > { %v1728_v48 = vmul.f32 %v1721_v46, %v1704_v39  ;;  %v1729_v49 = vmul.f32 %v1725_v47, %v1706_v42 }
 0x33f   : > { %2379 = vtanh.f32 %v1728_v48 }
 0x340   : > { %2381 = vtanh.f32 %v1729_v49 }
 0x34c   : > { %v2380_v50 = vpop.eup %2379 }
 0x34d   : > { %v2382_v51 = vpop.eup %2381  ;;  %1732 = vst [vmem:[%s2989_s2] sm:$0xff] %v2380_v50 }
 0x34e   : > { %1733 = vst [vmem:[%s2989_s2 + $0x8] sm:$0xff] %v2382_v51 }
 0x34f PF: > { %s26_s18 = sadd.s32 1, %s2521_s18   ;;  %s2990_s22 = sld [smem:[#allocation10_spill]] }
 0x350   : > { %p23_p6 = scmp.ge.s32.totalorder %s26_s18, 4   ;;  %s2991_s15 = sld [smem:[#allocation12_spill]] }
 0x351   : > { %s2992_s27 = sld [smem:[#allocation11_spill]]  ;;  %s2993_s13 = smov %s2505_s14 }
 0x352   : > { %s2995_s16 = smov %s2517_s17 }
 0x353   :  { %25 = sbr.rel (!%p23_p6) target bundleno = 11 (0xb), region = 150 }
 0x355   : > { %s2994_s14 = smov %s2990_s22 }
 0x357   : > { %s2996_s17 = smov %s2992_s27 }
 0x358   :  { %1755 = vsyncpa [#allocation4], 1 }
 0x359   :  { %1757 = vsyncpa [#allocation4 + $0x1], 1 }
 0x35a   :  { %1758 = vsyncpa [#allocation6], 1 }
 0x35b   :  { %1760 = vsyncpa [#allocation6 + $0x1], 1 }

</bundles_post_ra>
